<compile_context>
chip_gen: v5e
topology: v5e:2x2
jax: 0.10.0
libtpu: 0.0.40
codegen_flags: <defaults>
</compile_context>

<pallas_src>
import functools

import jax
import jax.numpy as jnp
from jax.experimental import pallas as pl
from jax.experimental.pallas import tpu as pltpu

EPS = 1e-6


def _round_up(n, m):
    return ((n + m - 1) // m) * m


def _sublayer_connection_kernel(x_ref, gamma_ref, beta_ref, w_ref, b_ref, o_ref, *, d_real):
    # x_ref: (row_tile, D_pad) f32; gamma/beta/b: (1, D_pad) f32; w: (D_pad, D_pad) bf16
    x = x_ref[...]

    # --- LayerNorm, one-pass stats (torch.std default: unbiased N-1; eps added to std) ---
    # Padded columns of x are zero, so sum(x) and sum(x*x) over the full lane width are
    # already the sums over the real d_model columns; no mask needed.
    s1 = jnp.sum(x, axis=-1, keepdims=True)
    s2 = jnp.sum(x * x, axis=-1, keepdims=True)
    mean = s1 * (1.0 / d_real)
    var = (s2 - d_real * mean * mean) * (1.0 / (d_real - 1))
    var = jnp.maximum(var, 0.0)  # guard tiny negative from one-pass rounding
    inv = pl.reciprocal(jnp.sqrt(var) + EPS, approx=True)  # EUP slot (free-ish)
    # Padded gamma/beta entries are zero -> normed is exactly zero on padded lanes.
    normed = gamma_ref[...] * ((x - mean) * inv) + beta_ref[...]

    # --- sublayer: Linear(d_model, d_model) on the MXU, bf16 operands, f32 accumulate ---
    y = jnp.dot(normed.astype(jnp.bfloat16), w_ref[...],
                preferred_element_type=jnp.float32) + b_ref[...]

    # --- dropout (inference = identity) + residual (re-read x_ref; short live range) ---
    o_ref[...] = (x_ref[...] + y).astype(o_ref.dtype)


def prepare_params(gamma, beta, w, b, d_pad):
    """One-time parameter prep (pad to lane-dense width, W -> bf16). Call once, reuse."""
    d = gamma.shape[0]
    pad = d_pad - d
    gamma2 = jnp.pad(gamma.astype(jnp.float32), (0, pad)).reshape(1, d_pad)
    beta2 = jnp.pad(beta.astype(jnp.float32), (0, pad)).reshape(1, d_pad)
    b2 = jnp.pad(b.astype(jnp.float32), (0, pad)).reshape(1, d_pad)
    w2 = jnp.pad(w.astype(jnp.float32), ((0, pad), (0, pad))).astype(jnp.bfloat16)
    return gamma2, beta2, w2, b2


@functools.partial(jax.jit, static_argnames=("row_tile",))
def sublayer_connection(x, gamma_p, beta_p, w_p, b_p, *, row_tile=512):
    """x: (B, S, D) float32; params pre-padded via prepare_params. Returns (B, S, D)."""
    B, S, D = x.shape
    assert D >= 2, "unbiased std (N-1) requires d_model >= 2"
    rows = B * S
    D_pad = w_p.shape[-1]
    assert D_pad % 128 == 0 and D_pad >= D

    # Row tile: multiple of 8 (f32 sublane).  Small inputs: split toward rows/2 so the
    # grid has >= 2 "parallel" steps and both v7x TensorCores get work.
    if rows <= row_tile:
        row_tile = max(8, _round_up((rows + 1) // 2, 8))
    row_tile = _round_up(row_tile, 8)
    num_tiles = pl.cdiv(rows, row_tile)          # no silently dropped trailing rows
    rows_pad = num_tiles * row_tile

    # Pad activations only when actually misaligned (pad/slice are extra HBM passes).
    x2 = x.reshape(rows, D)
    needs_pad = (rows_pad != rows) or (D_pad != D)
    if needs_pad:
        x2 = jnp.pad(x2, ((0, rows_pad - rows), (0, D_pad - D)))

    # VMEM budget: double-buffered in/out x tiles + single-buffered bf16 W & params
    # + ~3x tile for in-kernel intermediates (centered f32, normed bf16, f32 matmul out).
    tile_bytes = row_tile * D_pad * 4
    w_bytes = D_pad * D_pad * 2
    param_bytes = 3 * D_pad * 4
    needed = 2 * (2 * tile_bytes) + w_bytes + param_bytes + 3 * tile_bytes + (2 << 20)
    try:
        vmem_cap = int(pltpu.get_tpu_info().vmem_capacity_bytes)
    except Exception:
        vmem_cap = 64 << 20  # conservative (v7x per-core VMEM)
    vmem_limit = int(min(max(needed, 32 << 20), vmem_cap - (8 << 20)))

    kernel = functools.partial(_sublayer_connection_kernel, d_real=D)
    const_map = lambda i: (0, 0)

    out = pl.pallas_call(
        kernel,
        out_shape=jax.ShapeDtypeStruct((rows_pad, D_pad), x.dtype),
        grid_spec=pltpu.PrefetchScalarGridSpec(
            num_scalar_prefetch=0,
            grid=(num_tiles,),
            in_specs=[
                pl.BlockSpec((row_tile, D_pad), lambda i: (i, 0)),                   # x rows
                pl.BlockSpec((1, D_pad), const_map, pipeline_mode=pl.Buffered(1)),   # gamma
                pl.BlockSpec((1, D_pad), const_map, pipeline_mode=pl.Buffered(1)),   # beta
                pl.BlockSpec((D_pad, D_pad), const_map, pipeline_mode=pl.Buffered(1)),  # W
                pl.BlockSpec((1, D_pad), const_map, pipeline_mode=pl.Buffered(1)),   # bias
            ],
            out_specs=pl.BlockSpec((row_tile, D_pad), lambda i: (i, 0)),
        ),
        compiler_params=pltpu.CompilerParams(
            dimension_semantics=("parallel",),
            vmem_limit_bytes=vmem_limit,
        ),
    )(x2, gamma_p, beta_p, w_p, b_p)

    if needs_pad:
        out = out[:rows, :D]
    return out.reshape(B, S, D)


def _reference(x, gamma, beta, w, b):
    mean = jnp.mean(x, axis=-1, keepdims=True)
    xc = x - mean
    var = jnp.sum(xc * xc, axis=-1, keepdims=True) / (x.shape[-1] - 1)  # unbiased (torch.std)
    std = jnp.sqrt(var)
    normed = gamma * xc / (std + EPS) + beta
    y = normed @ w + b
    return x + y


if __name__ == "__main__":
    key = jax.random.PRNGKey(0)
    B, S, D = 2, 8, 32  # batch=2, seq=8, d_model=32

    kx, kw, kb = jax.random.split(key, 3)
    x = jax.random.normal(kx, (B, S, D), dtype=jnp.float32)

    # Module parameters (deterministic init): LayerNorm gamma=1, beta=0;
    # sublayer Linear weights drawn from PRNGKey(0)-derived keys.
    gamma = jnp.ones((D,), dtype=jnp.float32)
    beta = jnp.zeros((D,), dtype=jnp.float32)
    w = jax.random.normal(kw, (D, D), dtype=jnp.float32) * 0.05
    b = jax.random.normal(kb, (D,), dtype=jnp.float32) * 0.05

    # One-time parameter prep (pad + bf16 cast), hoisted off the per-call path.
    D_pad = _round_up(D, 128)
    params = prepare_params(gamma, beta, w, b, D_pad)
    params = jax.block_until_ready(params)
    gamma_p, beta_p, w_p, b_p = params

    out = sublayer_connection(x, gamma_p, beta_p, w_p, b_p)
    out = jax.block_until_ready(out)

    ref = _reference(x, gamma, beta, w, b)
    assert out.shape == (B, S, D)
    # Tolerance covers bf16 MXU operands + approx reciprocal (f32 accumulation throughout).
    assert jnp.allclose(out, ref, atol=1e-2, rtol=1e-2), "mismatch vs reference"

    print("KERNEL_OK")
</pallas_src>

<mosaic_0001>
module attributes {stable_mosaic.version = 11 : i64} {
  func.func @_sublayer_connection_kernel(%arg0: i32, %arg1: memref<8x128xf32, #tpu.memory_space<vmem>>, %arg2: memref<1x128xf32, #tpu.memory_space<vmem>>, %arg3: memref<1x128xf32, #tpu.memory_space<vmem>>, %arg4: memref<128x128xbf16, #tpu.memory_space<vmem>>, %arg5: memref<1x128xf32, #tpu.memory_space<vmem>>, %arg6: memref<8x128xf32, #tpu.memory_space<vmem>>) attributes {dimension_semantics = [#tpu.dimension_semantics<parallel>], iteration_bounds = array<i64: 2>, scalar_prefetch = 0 : i64, scratch_operands = 0 : i64, tpu.core_type = #tpu.core_type<tc>, window_params = [{transform_indices = @transform_0, window_bounds = array<i64: 8, 128>}, {pipeline_mode = #tpu.pipeline_mode<synchronous>, transform_indices = @transform_1, window_bounds = array<i64: 1, 128>}, {pipeline_mode = #tpu.pipeline_mode<synchronous>, transform_indices = @transform_2, window_bounds = array<i64: 1, 128>}, {pipeline_mode = #tpu.pipeline_mode<synchronous>, transform_indices = @transform_3, window_bounds = array<i64: 128, 128>}, {pipeline_mode = #tpu.pipeline_mode<synchronous>, transform_indices = @transform_4, window_bounds = array<i64: 1, 128>}, {transform_indices = @transform_5, window_bounds = array<i64: 8, 128>}]} {
    %c0 = arith.constant 0 : index
    %c0_0 = arith.constant 0 : index
    %0 = vector.load %arg1[%c0, %c0_0] : memref<8x128xf32, #tpu.memory_space<vmem>>, vector<8x128xf32>
    %cst = arith.constant dense<0.000000e+00> : vector<8xf32>
    %1 = vector.multi_reduction <add>, %0, %cst [1] : vector<8x128xf32> to vector<8xf32>
    %2 = vector.shape_cast %1 : vector<8xf32> to vector<8x1xf32>
    %3 = arith.mulf %0, %0 : vector<8x128xf32>
    %cst_1 = arith.constant dense<0.000000e+00> : vector<8xf32>
    %4 = vector.multi_reduction <add>, %3, %cst_1 [1] : vector<8x128xf32> to vector<8xf32>
    %5 = vector.shape_cast %4 : vector<8xf32> to vector<8x1xf32>
    %cst_2 = arith.constant 3.125000e-02 : f32
    %6 = vector.broadcast %cst_2 : f32 to vector<8x1xf32>
    %7 = arith.mulf %2, %6 : vector<8x1xf32>
    %cst_3 = arith.constant 3.200000e+01 : f32
    %8 = vector.broadcast %cst_3 : f32 to vector<8x1xf32>
    %9 = arith.mulf %8, %7 : vector<8x1xf32>
    %10 = arith.mulf %9, %7 : vector<8x1xf32>
    %11 = arith.subf %5, %10 : vector<8x1xf32>
    %cst_4 = arith.constant 0.0322580636 : f32
    %12 = vector.broadcast %cst_4 : f32 to vector<8x1xf32>
    %13 = arith.mulf %11, %12 : vector<8x1xf32>
    %cst_5 = arith.constant 0.000000e+00 : f32
    %14 = vector.broadcast %cst_5 : f32 to vector<8x1xf32>
    %15 = arith.maximumf %13, %14 : vector<8x1xf32>
    %16 = math.sqrt %15 : vector<8x1xf32>
    %cst_6 = arith.constant 9.99999997E-7 : f32
    %17 = vector.broadcast %cst_6 : f32 to vector<8x1xf32>
    %18 = arith.addf %16, %17 : vector<8x1xf32>
    %19 = tpu.reciprocal %18 {approx = true} : vector<8x1xf32> -> vector<8x1xf32>
    %c0_7 = arith.constant 0 : index
    %c0_8 = arith.constant 0 : index
    %20 = vector.load %arg2[%c0_7, %c0_8] : memref<1x128xf32, #tpu.memory_space<vmem>>, vector<1x128xf32>
    %21 = vector.broadcast %7 : vector<8x1xf32> to vector<8x128xf32>
    %22 = arith.subf %0, %21 : vector<8x128xf32>
    %23 = vector.broadcast %19 : vector<8x1xf32> to vector<8x128xf32>
    %24 = arith.mulf %22, %23 : vector<8x128xf32>
    %25 = vector.broadcast %20 : vector<1x128xf32> to vector<8x128xf32>
    %26 = arith.mulf %25, %24 : vector<8x128xf32>
    %c0_9 = arith.constant 0 : index
    %c0_10 = arith.constant 0 : index
    %27 = vector.load %arg3[%c0_9, %c0_10] : memref<1x128xf32, #tpu.memory_space<vmem>>, vector<1x128xf32>
    %28 = vector.broadcast %27 : vector<1x128xf32> to vector<8x128xf32>
    %29 = arith.addf %26, %28 : vector<8x128xf32>
    %30 = arith.truncf %29 : vector<8x128xf32> to vector<8x128xbf16>
    %c0_11 = arith.constant 0 : index
    %c0_12 = arith.constant 0 : index
    %31 = vector.load %arg4[%c0_11, %c0_12] : memref<128x128xbf16, #tpu.memory_space<vmem>>, vector<128x128xbf16>
    %cst_13 = arith.constant dense<0.000000e+00> : vector<8x128xf32>
    %32 = tpu.matmul %30, %31, %cst_13 {dimension_numbers = #tpu.dot_dimension_numbers<[1], [0], [0], [1], [0, 0, 1, 1], [], []>} : vector<8x128xbf16>, vector<128x128xbf16>, vector<8x128xf32> -> vector<8x128xf32>
    %c0_14 = arith.constant 0 : index
    %c0_15 = arith.constant 0 : index
    %33 = vector.load %arg5[%c0_14, %c0_15] : memref<1x128xf32, #tpu.memory_space<vmem>>, vector<1x128xf32>
    %34 = vector.broadcast %33 : vector<1x128xf32> to vector<8x128xf32>
    %35 = arith.addf %32, %34 : vector<8x128xf32>
    %c0_16 = arith.constant 0 : index
    %c0_17 = arith.constant 0 : index
    %36 = vector.load %arg1[%c0_16, %c0_17] : memref<8x128xf32, #tpu.memory_space<vmem>>, vector<8x128xf32>
    %37 = arith.addf %36, %35 : vector<8x128xf32>
    %c0_18 = arith.constant 0 : index
    %c0_19 = arith.constant 0 : index
    %38 = vector.load %arg6[%c0_18, %c0_19] : memref<8x128xf32, #tpu.memory_space<vmem>>, vector<8x128xf32>
    tpu.vector_store %arg6[%c0_18, %c0_19], %37 {strides = array<i32>} : memref<8x128xf32, #tpu.memory_space<vmem>>, vector<8x128xf32>,
    return
  }
  func.func @transform_0(%arg0: i32) -> (i32, i32) {
    %c0_i32 = arith.constant 0 : i32
    %c0_i32_0 = arith.constant 0 : i32
    return %arg0, %c0_i32 : i32, i32
  }
  func.func @transform_1(%arg0: i32) -> (i32, i32) {
    %c0_i32 = arith.constant 0 : i32
    %c0_i32_0 = arith.constant 0 : i32
    %c0_i32_1 = arith.constant 0 : i32
    return %c0_i32, %c0_i32_0 : i32, i32
  }
  func.func @transform_2(%arg0: i32) -> (i32, i32) {
    %c0_i32 = arith.constant 0 : i32
    %c0_i32_0 = arith.constant 0 : i32
    %c0_i32_1 = arith.constant 0 : i32
    return %c0_i32, %c0_i32_0 : i32, i32
  }
  func.func @transform_3(%arg0: i32) -> (i32, i32) {
    %c0_i32 = arith.constant 0 : i32
    %c0_i32_0 = arith.constant 0 : i32
    %c0_i32_1 = arith.constant 0 : i32
    return %c0_i32, %c0_i32_0 : i32, i32
  }
  func.func @transform_4(%arg0: i32) -> (i32, i32) {
    %c0_i32 = arith.constant 0 : i32
    %c0_i32_0 = arith.constant 0 : i32
    %c0_i32_1 = arith.constant 0 : i32
    return %c0_i32, %c0_i32_0 : i32, i32
  }
  func.func @transform_5(%arg0: i32) -> (i32, i32) {
    %c0_i32 = arith.constant 0 : i32
    %c0_i32_0 = arith.constant 0 : i32
    return %arg0, %c0_i32 : i32, i32
  }
}

</mosaic_0001>

<bundles_post_ra>
// kernel: sublayer_connection.1
= control target key start
LH: loop header
LB: loop body
LE: loop exit
PB: predicated region body
PF: predicated region fallthrough
CT: control target
= control target key end

     0   :  { %10 = vsyncpa [#allocation3], 0  ;;  %s578_s18 = smov 0   ;;  %s614_s0 = inlined_call_operand.vmem [shape: f32[16,128], index: 0, kind: input, shape index: {}]   ;;  %s615_s1 = inlined_call_operand.vmem [shape: f32[1,128], index: 1, kind: input, shape index: {}]   ;;  %s616_s2 = inlined_call_operand.vmem [shape: f32[1,128], index: 2, kind: input, shape index: {}]   ;;  %s617_s3 = inlined_call_operand.hbm [shape: bf16[128,128], index: 3, kind: input, shape index: {}]   ;;  %s618_s4 = inlined_call_operand.vmem [shape: f32[1,128], index: 4, kind: input, shape index: {}]   ;;  %s619_s5 = inlined_call_operand.vmem [shape: f32[16,128], index: 5, kind: output, shape index: {}]  }
   0x1 LB: > { %s174_s21 = sshll.u32 %s617_s3, 4  ;;  %s424_s22 = sadd.s32 4294967295, %s543_s18   ;;  %s543_s18 = sphi %s578_s18, %s16_s18   ;;  %s175_s21 = int_to_ptr.hbm [resolvable:$true] %s174_s21 }
   0x2   : > { %p426_p0 = scmp.ge.s32.totalorder %s543_s18, 1  ;;  %p157_p1 = scmp.lt.s32.totalorder %s543_s18, 3 }
   0x3   : > { %p483_p2 = scmp.eq.s32.totalorder %s424_s22, 0  ;;  %s545_s23 = smov [#allocation2]  }
   0x4   : > { %p158_p3 = pnand %p426_p0, %p157_p1  ;;  %s176_s24 = sshll.u32 %s545_s23, 4  ;;  %s177_s24 = int_to_ptr.vmem [resolvable:$true] %s176_s24 }
   0x5   : > { %s546_s25 = smov 64   ;;  %s547_s26 = smov 4  }
   0x6   : > { %p479_p4 = pneg %p158_p3  ;;  %202 = sbr.rel (%p158_p3) target bundleno = 320 (0x140), region = 40 }
   0x8   : > { %p480_p5 = pnand %p483_p2, %p479_p4 }
   0xa   : > { %482 = dma.hbm_to_vmem [thread:$0]  (!%p480_p5), %s175_s21, 1024, %s177_s24, [#allocation3], %s546_s25, %s546_s25, %s547_s26  }
   0xb   : > { %538 = dma.done.wait (%p483_p2), [#allocation3], 1024  }
   0xc   : > { %540 = vsyncadd (%p483_p2), [#allocation3], 4294966272  ;;  %p229_p6 = scmp.lt.s32.totalorder %s424_s22, 1  ;;  %v474_v2 = vld [vmem:[#allocation2 + $0x38] sm:$0xff]  ;;  %v473_v3 = vld [vmem:[#allocation2 + $0x30] sm:$0xff] }
   0xd   : > { %344 = vmatpush.bf16.msra.mxu0 %v474_v2  ;;  %v472_v4 = vld [vmem:[#allocation2 + $0x28] sm:$0xff]  ;;  %v471_v5 = vld [vmem:[#allocation2 + $0x20] sm:$0xff]  ;;  %v470_v8 = vld [vmem:[#allocation2 + $0x18] sm:$0xff] }
   0xe   : > { %s621_s22 = smov (!%p229_p6, %s424_s22), 1  ;;  %v469_v10 = vld [vmem:[#allocation2 + $0x10] sm:$0xff]  ;;  %v468_v14 = vld [vmem:[#allocation2 + $0x8] sm:$0xff]  ;;  %v467_v17 = vld [vmem:[#allocation2] sm:$0xff] }
   0xf   : > { %s431_s27 = sshll.u32 %s621_s22, 3  ;;  %v496_v30 = vld [vmem:[%s615_s1] ss:$0 sm:$0xff] }
  0x10   : > { %s232_s30 = scalar_lea.vmem %s614_s0, %s431_s27  ;;  %v497_v33 = vld [vmem:[%s616_s2] ss:$0 sm:$0xff]  ;;  %s236_s14 = scalar_lea.vmem %s619_s5, %s431_s27 }
  0x11   : > { %v237_v0 = vld [vmem:[%s232_s30] sm:$0xff]  ;;  %345 = vmatpush.bf16.msra.mxu0 %v473_v3 }
  0x12   : > { %238 = vadd.xlane.f32.xlu0 %v237_v0  ;;  %v240_v1 = vmul.f32 %v237_v0, %v237_v0  ;;  %v498_v37 = vld [vmem:[%s618_s4] ss:$0 sm:$0xff] }
  0x15   : > { %346 = vmatpush.bf16.msra.mxu0 %v472_v4 }
  0x19   : > { %347 = vmatpush.bf16.msra.mxu0 %v471_v5 }
  0x1a   : > { %241 = vadd.xlane.f32.xlu0 %v240_v1 }
  0x1d   : > { %348 = vmatpush.bf16.msra.mxu0 %v470_v8 }
  0x21   : > { %349 = vmatpush.bf16.msra.mxu0 %v469_v10 }
  0x25   : > { %350 = vmatpush.bf16.msra.mxu0 %v468_v14 }
  0x29   : > { %351 = vmatpush.bf16.msra.mxu0 %v467_v17 }
  0x85   : > { %v239_v6 = vpop.xlane.xlu0 %238 }
  0x86   : > { %v243_v7 = vmul.f32 0.03125, %v239_v6 }
  0x88   : > { %v244_v9 = vmul.f32 32.0, %v243_v7  ;;  %v264_v29 = vsub.f32 %v237_v0, %v243_v7 }
  0x8a   : > { %v245_v11 = vmul.f32 %v244_v9, %v243_v7 }
  0x8d   : > { %v242_v12 = vpop.xlane.xlu0 %241 }
  0x8e   : > { %v246_v13 = vsub.f32 %v242_v12, %v245_v11 }
  0x90   : > { %v247_v15 = vmul.f32 0.032258064, %v246_v13 }
  0x92   : > { %v248_v16 = vmax.f32 %v247_v15, 0.0 }
  0x94   : > { %499 = vrsqrt.f32 %v248_v16  ;;  %vm256_vm0 = vcmp.eq.f32.partialorder %v248_v16, inf  ;;  %v259_v25 = vand.u32 2147483648, %v248_v16  ;;  %vm258_vm1 = vcmp.eq.f32.partialorder %v248_v16, 0.0 }
  0x9a   : > { %v500_v18 = vpop.eup %499 }
  0x9b   : > { %v250_v19 = vmul.f32 %v500_v18, %v248_v16 }
  0x9d   : > { %v251_v20 = vmul.f32 %v500_v18, %v250_v19 }
  0x9f   : > { %v252_v21 = vmul.f32 0.5, %v251_v20 }
  0xa1   : > { %v253_v22 = vsub.f32 1.5, %v252_v21 }
  0xa3   : > { %v254_v23 = vmul.f32 %v500_v18, %v253_v22 }
  0xa5   : > { %v255_v24 = vmul.f32 %v254_v23, %v248_v16 }
  0xa7   : > { %v257_v26 = vsel %vm256_vm0, %v248_v16, %v255_v24 }
  0xa8   : > { %v260_v27 = vsel %vm258_vm1, %v259_v25, %v257_v26 }
  0xa9   : > { %v261_v28 = vadd.f32 1e-06, %v260_v27 }
  0xab   : > { %501 = vrcp.f32 %v261_v28 }
  0xb1   : > { %v502_v31 = vpop.eup %501 }
  0xb2   : > { %v265_v32 = vmul.f32 %v502_v31, %v264_v29 }
  0xb4   : > { %v269_v34 = vmul.f32 %v496_v30, %v265_v32 }
  0xb6   : > { %v274_v35 = vadd.f32 %v497_v33, %v269_v34 }
  0xb8   : > { %v275_v36 = vpack.c.bf16 %v274_v35, %v274_v35 }
  0xba   : > { %352 = vmatmul.bf16.vlgmr.msra.gmra.mxu0 %v275_v36 }
 0x137   : > { %v353_v38 = vpop.f32.mrf.mxu0 }
 0x138   : > { %v354_v39 = vadd.f32 %v498_v37, %v353_v38 }
 0x13a   : > { %v357_v40 = vadd.f32 %v354_v39, %v237_v0 }
 0x13c   : > { %358 = vst [vmem:[%s236_s14] sm:$0xff] %v357_v40 }
 0x13f   : > { %v355_v41 = vpop.f32.mrf.mxu0 }
 0x140 PF: > { %s16_s18 = sadd.s32 1, %s543_s18  }
 0x141   : > { %p13_p7 = scmp.ge.s32.totalorder %s16_s18, 4  }
 0x143   :  { %15 = sbr.rel (!%p13_p7) target bundleno = 1 (0x1), region = 75 }
 0x148   :  { %378 = vsyncpa [#allocation3], 1 }
 0x149   :  { %380 = vsyncpa [#allocation3 + $0x1], 1 }

</bundles_post_ra>
